<compile_context>
chip_gen: v6e
topology: v6e:2x2x1
jax: 0.10.0
libtpu: 0.0.40
codegen_flags: <defaults>
</compile_context>

<pallas_src>
import jax
import jax.numpy as jnp
from jax.experimental import pallas as pl
from jax.experimental.pallas import tpu as pltpu


# ----------------------------------------------------------------------------
# Kernels (feature-major: batch on the lane axis)
# ----------------------------------------------------------------------------
def _mlp_t(x_ref, w1_ref, b1_ref, w2_ref, b2_ref):
    """y_T = W2 @ tanh(W1 @ x_T + b1) + b2, shape (O, TB), f32."""
    # (H, I) @ (I, TB) -> (H, TB) on the MXU, f32 accumulate.
    h = jnp.dot(w1_ref[...], x_ref[...], preferred_element_type=jnp.float32)
    h = jnp.tanh(h + b1_ref[...])                 # b1 is (H, 1): lane broadcast
    # (O, H) @ (H, TB) -> (O, TB); cast h to the weight dtype so bf16 weights
    # use the bf16 MXU path while accumulation stays f32.
    y = jnp.dot(w2_ref[...], h.astype(w2_ref.dtype),
                preferred_element_type=jnp.float32)
    return y + b2_ref[...]                        # b2 is (O, 1): lane broadcast


def _fwd_kernel(x_ref, w1_ref, b1_ref, w2_ref, b2_ref, q_ref):
    q_ref[...] = _mlp_t(x_ref, w1_ref, b1_ref, w2_ref, b2_ref).astype(q_ref.dtype)


def _predict_kernel(x_ref, w1_ref, b1_ref, w2_ref, b2_ref, a_ref):
    y = _mlp_t(x_ref, w1_ref, b1_ref, w2_ref, b2_ref)      # (O, TB)
    n_act = y.shape[0]
    # First-occurrence argmax over the feature (sublane) axis, kept 2-D so the
    # (1, TB) result is a lane-dense store.  NaN rows (y == y_max all-false)
    # are clamped to the last action instead of producing an OOB index.
    row = jax.lax.broadcasted_iota(jnp.int32, y.shape, dimension=0)
    y_max = jnp.max(y, axis=0, keepdims=True)
    a = jnp.min(jnp.where(y == y_max, row, jnp.int32(n_act)),
                axis=0, keepdims=True)
    a_ref[...] = jnp.minimum(a, n_act - 1)


# ----------------------------------------------------------------------------
# Wrappers
# ----------------------------------------------------------------------------
def _round_up(n, m):
    return ((n + m - 1) // m) * m


def _run(kernel, out_rows, out_dtype, x_t, w1, b1, w2, b2, block_b):
    I, B = x_t.shape
    H, I2 = w1.shape
    O, H2 = w2.shape
    assert I2 == I and H2 == H
    assert b1.shape == (H, 1) and b2.shape == (O, 1)

    # Lane-axis batch tile: multiple of 128, capped by block_b, shrunk so the
    # grid has >= 2 tiles when the batch allows it (feeds both v7x TCs).
    tb = min(block_b, _round_up(pl.cdiv(B, 2), 128))
    tb = max(128, _round_up(tb, 128))
    grid = (pl.cdiv(B, tb),)   # ragged last block: Pallas clips its writes

    return pl.pallas_call(
        kernel,
        out_shape=jax.ShapeDtypeStruct((out_rows, B), out_dtype),
        grid=grid,
        in_specs=[
            pl.BlockSpec((I, tb), lambda i: (0, i)),   # x_T: one batch tile / step
            pl.BlockSpec((H, I), lambda i: (0, 0)),    # W1: VMEM-resident
            pl.BlockSpec((H, 1), lambda i: (0, 0)),    # b1: VMEM-resident
            pl.BlockSpec((O, H), lambda i: (0, 0)),    # W2: VMEM-resident
            pl.BlockSpec((O, 1), lambda i: (0, 0)),    # b2: VMEM-resident
        ],
        out_specs=pl.BlockSpec((out_rows, tb), lambda i: (0, i)),
        compiler_params=pltpu.CompilerParams(
            dimension_semantics=("parallel",),   # v7x: batch tiles over 2 TCs
        ),
    )(x_t, w1, b1, w2, b2)


def _prep(x, w1, b1, w2, b2, matmul_dtype):
    """PyTorch-native params -> kernel layout; optional bf16 matmul operands."""
    x_t = x.T                                   # (I, B): batch on the lane axis
    b1c = b1.reshape(-1, 1).astype(jnp.float32)  # (H, 1)
    b2c = b2.reshape(-1, 1).astype(jnp.float32)  # (O, 1)
    if matmul_dtype is not None:
        x_t = x_t.astype(matmul_dtype)
        w1 = w1.astype(matmul_dtype)
        w2 = w2.astype(matmul_dtype)
    return x_t, w1, b1c, w2, b2c


def dqn_forward(x, w1, b1, w2, b2, *, block_b=2048, matmul_dtype=None):
    """DQN.forward: Q-values (B, output_size).

    x: (B, input_size); w1: (hidden, input); b1: (hidden,);
    w2: (output, hidden); b2: (output,)   — PyTorch-native layouts.
    """
    out_dtype = x.dtype
    x_t, w1k, b1k, w2k, b2k = _prep(x, w1, b1, w2, b2, matmul_dtype)
    y_t = _run(_fwd_kernel, w2.shape[0], out_dtype, x_t, w1k, b1k, w2k, b2k, block_b)
    return y_t.T                               # (B, O)


def dqn_predict(x, w1, b1, w2, b2, *, block_b=2048, matmul_dtype=None):
    """DQN.predict: argmax action per row, argmax fused in-kernel."""
    x_t, w1k, b1k, w2k, b2k = _prep(x, w1, b1, w2, b2, matmul_dtype)
    a = _run(_predict_kernel, 1, jnp.int32, x_t, w1k, b1k, w2k, b2k, block_b)
    return a[0]                                # (B,)


# ----------------------------------------------------------------------------
# Self-test
# ----------------------------------------------------------------------------
if __name__ == "__main__":
    # Module dims (input=16, hidden=32, output=8); batch 500 exercises the
    # batch grid (2 tiles of 256) and the ragged last block (500 % 256 != 0).
    B, input_size, hidden_size, output_size = 500, 16, 32, 8

    key = jax.random.PRNGKey(0)
    kx, kw1, kb1, kw2, kb2 = jax.random.split(key, 5)

    s1 = 1.0 / jnp.sqrt(input_size)
    s2 = 1.0 / jnp.sqrt(hidden_size)
    x = jax.random.normal(kx, (B, input_size), dtype=jnp.float32)
    # PyTorch-native parameter layouts: weight (out, in), bias (out,).
    w1 = jax.random.uniform(kw1, (hidden_size, input_size), jnp.float32, -s1, s1)
    b1 = jax.random.uniform(kb1, (hidden_size,), jnp.float32, -s1, s1)
    w2 = jax.random.uniform(kw2, (output_size, hidden_size), jnp.float32, -s2, s2)
    b2 = jax.random.uniform(kb2, (output_size,), jnp.float32, -s2, s2)

    y_ref = jnp.tanh(x @ w1.T + b1) @ w2.T + b2

    # forward(), f32
    y = dqn_forward(x, w1, b1, w2, b2)
    jax.block_until_ready(y)
    assert y.shape == (B, output_size)
    assert jnp.allclose(y, y_ref, atol=1e-5, rtol=1e-5)

    # predict(), f32 — the fused in-kernel argmax must match argmax of the
    # kernel's own Q-values (bit-identical math in both kernels).
    actions = dqn_predict(x, w1, b1, w2, b2)
    jax.block_until_ready(actions)
    assert actions.shape == (B,)
    assert actions.dtype == jnp.int32
    assert jnp.array_equal(actions, jnp.argmax(y, axis=1))

    # bf16 matmul-operand path (bandwidth optimization for v6e/v7x).
    y_bf16 = dqn_forward(x, w1, b1, w2, b2, matmul_dtype=jnp.bfloat16)
    a_bf16 = dqn_predict(x, w1, b1, w2, b2, matmul_dtype=jnp.bfloat16)
    jax.block_until_ready((y_bf16, a_bf16))
    assert jnp.allclose(y_bf16, y_ref, atol=3e-2, rtol=3e-2)
    assert jnp.array_equal(a_bf16, jnp.argmax(y_bf16, axis=1))

    print("KERNEL_OK")
</pallas_src>

<mosaic_0001>
module attributes {stable_mosaic.version = 11 : i64} {
  func.func @_fwd_kernel(%arg0: i32, %arg1: memref<16x256xf32, #tpu.memory_space<vmem>>, %arg2: memref<32x16xf32, #tpu.memory_space<vmem>>, %arg3: memref<32x1xf32, #tpu.memory_space<vmem>>, %arg4: memref<8x32xf32, #tpu.memory_space<vmem>>, %arg5: memref<8x1xf32, #tpu.memory_space<vmem>>, %arg6: memref<8x256xf32, #tpu.memory_space<vmem>>) attributes {dimension_semantics = [#tpu.dimension_semantics<parallel>], iteration_bounds = array<i64: 2>, scalar_prefetch = 0 : i64, scratch_operands = 0 : i64, tpu.core_type = #tpu.core_type<tc>, window_params = [{transform_indices = @transform_0, window_bounds = array<i64: 16, 256>}, {pipeline_mode = #tpu.pipeline_mode<synchronous>, transform_indices = @transform_1, window_bounds = array<i64: 32, 16>}, {pipeline_mode = #tpu.pipeline_mode<synchronous>, transform_indices = @transform_2, window_bounds = array<i64: 32, 1>}, {pipeline_mode = #tpu.pipeline_mode<synchronous>, transform_indices = @transform_3, window_bounds = array<i64: 8, 32>}, {pipeline_mode = #tpu.pipeline_mode<synchronous>, transform_indices = @transform_4, window_bounds = array<i64: 8, 1>}, {transform_indices = @transform_5, window_bounds = array<i64: 8, 256>}]} {
    %c0 = arith.constant 0 : index
    %c0_0 = arith.constant 0 : index
    %0 = vector.load %arg2[%c0, %c0_0] : memref<32x16xf32, #tpu.memory_space<vmem>>, vector<32x16xf32>
    %c0_1 = arith.constant 0 : index
    %c0_2 = arith.constant 0 : index
    %1 = vector.load %arg1[%c0_1, %c0_2] : memref<16x256xf32, #tpu.memory_space<vmem>>, vector<16x256xf32>
    %cst = arith.constant dense<0.000000e+00> : vector<32x256xf32>
    %2 = tpu.matmul %0, %1, %cst {dimension_numbers = #tpu.dot_dimension_numbers<[1], [0], [0], [1], [0, 0, 1, 1], [], []>} : vector<32x16xf32>, vector<16x256xf32>, vector<32x256xf32> -> vector<32x256xf32>
    %c0_3 = arith.constant 0 : index
    %c0_4 = arith.constant 0 : index
    %3 = vector.load %arg3[%c0_3, %c0_4] : memref<32x1xf32, #tpu.memory_space<vmem>>, vector<32x1xf32>
    %4 = vector.broadcast %3 : vector<32x1xf32> to vector<32x256xf32>
    %5 = arith.addf %2, %4 : vector<32x256xf32>
    %6 = math.tanh %5 : vector<32x256xf32>
    %c0_5 = arith.constant 0 : index
    %c0_6 = arith.constant 0 : index
    %7 = vector.load %arg4[%c0_5, %c0_6] : memref<8x32xf32, #tpu.memory_space<vmem>>, vector<8x32xf32>
    %cst_7 = arith.constant dense<0.000000e+00> : vector<8x256xf32>
    %8 = tpu.matmul %7, %6, %cst_7 {dimension_numbers = #tpu.dot_dimension_numbers<[1], [0], [0], [1], [0, 0, 1, 1], [], []>} : vector<8x32xf32>, vector<32x256xf32>, vector<8x256xf32> -> vector<8x256xf32>
    %c0_8 = arith.constant 0 : index
    %c0_9 = arith.constant 0 : index
    %9 = vector.load %arg5[%c0_8, %c0_9] : memref<8x1xf32, #tpu.memory_space<vmem>>, vector<8x1xf32>
    %10 = vector.broadcast %9 : vector<8x1xf32> to vector<8x256xf32>
    %11 = arith.addf %8, %10 : vector<8x256xf32>
    %c0_10 = arith.constant 0 : index
    %c0_11 = arith.constant 0 : index
    %12 = vector.load %arg6[%c0_10, %c0_11] : memref<8x256xf32, #tpu.memory_space<vmem>>, vector<8x256xf32>
    tpu.vector_store %arg6[%c0_10, %c0_11], %11 {strides = array<i32>} : memref<8x256xf32, #tpu.memory_space<vmem>>, vector<8x256xf32>,
    return
  }
  func.func @transform_0(%arg0: i32) -> (i32, i32) {
    %c0_i32 = arith.constant 0 : i32
    %c0_i32_0 = arith.constant 0 : i32
    return %c0_i32, %arg0 : i32, i32
  }
  func.func @transform_1(%arg0: i32) -> (i32, i32) {
    %c0_i32 = arith.constant 0 : i32
    %c0_i32_0 = arith.constant 0 : i32
    %c0_i32_1 = arith.constant 0 : i32
    return %c0_i32, %c0_i32_0 : i32, i32
  }
  func.func @transform_2(%arg0: i32) -> (i32, i32) {
    %c0_i32 = arith.constant 0 : i32
    %c0_i32_0 = arith.constant 0 : i32
    %c0_i32_1 = arith.constant 0 : i32
    return %c0_i32, %c0_i32_0 : i32, i32
  }
  func.func @transform_3(%arg0: i32) -> (i32, i32) {
    %c0_i32 = arith.constant 0 : i32
    %c0_i32_0 = arith.constant 0 : i32
    %c0_i32_1 = arith.constant 0 : i32
    return %c0_i32, %c0_i32_0 : i32, i32
  }
  func.func @transform_4(%arg0: i32) -> (i32, i32) {
    %c0_i32 = arith.constant 0 : i32
    %c0_i32_0 = arith.constant 0 : i32
    %c0_i32_1 = arith.constant 0 : i32
    return %c0_i32, %c0_i32_0 : i32, i32
  }
  func.func @transform_5(%arg0: i32) -> (i32, i32) {
    %c0_i32 = arith.constant 0 : i32
    %c0_i32_0 = arith.constant 0 : i32
    return %c0_i32, %arg0 : i32, i32
  }
}

</mosaic_0001>

<bundles_post_ra>
// kernel: tpu_custom_call.1
= control target key start
LH: loop header
LB: loop body
LE: loop exit
PB: predicated region body
PF: predicated region fallthrough
CT: control target
= control target key end

     0   :  { %10 = vsyncpa [#allocation4], 0  ;;  %s863_s0 = inlined_call_operand.vmem [shape: f32[16,500], index: 0, kind: input, shape index: {}]   ;;  %s864_s1 = inlined_call_operand.vmem [shape: f32[32,16], index: 1, kind: input, shape index: {}]   ;;  %s865_s2 = inlined_call_operand.vmem [shape: f32[32,1], index: 2, kind: input, shape index: {}]   ;;  %s866_s3 = inlined_call_operand.vmem [shape: f32[8,32], index: 3, kind: input, shape index: {}]   ;;  %s867_s4 = inlined_call_operand.vmem [shape: f32[8,1], index: 4, kind: input, shape index: {}]   ;;  %s868_s5 = inlined_call_operand.hbm [shape: f32[8,500], index: 5, kind: output, shape index: {}]  }
   0x1   :  { %12 = vsyncpa [#allocation4 + $0x1], 0  ;;  %s732_s18 = smov 0   ;;  %s734_s19 = smov 0  }
   0x2   :  { %s736_s20 = smov 0   ;;  %s738_s21 = smov 0  }
   0x3 LB: > { %s556_s22 = sadd.s32 4294967295, %s697_s21   ;;  %s557_s23 = sadd.s32 4294967294, %s697_s21   ;;  %s697_s21 = sphi %s738_s21, %s876_s21   ;;  %s693_s20 = sphi %s736_s20, %s875_s20   ;;  %s689_s19 = sphi %s734_s19, %s874_s19   ;;  %s685_s18 = sphi %s732_s18, %s873_s18  }
   0x4   : > { %s755_s24 = sadd.s32 1, %s697_s21   ;;  %s25_s25 = sadd.s32 1, %s693_s20 }
   0x5   : > { %s22_s26 = ssub.s32 %s697_s21, %s755_s24  ;;  %p32_p0 = scmp.ne.s32.totalorder %s693_s20, %s689_s19 }
   0x6   : > { %p23_p1 = scmp.eq.s32.totalorder %s22_s26, 0  ;;  %p33_p2 = scmp.eq.s32.totalorder %s697_s21, 0 }
   0x7   : > { %p146_p3 = scmp.eq.s32.totalorder %s556_s22, 1  ;;  %p151_p4 = scmp.ne.s32.totalorder %s689_s19, %s685_s18 }
   0x8   : > { %s768_s27 = scalar_select %p23_p1, %s693_s20, %s25_s25  }
   0x9   : > { %p34_p5 = por %p33_p2, %p32_p0  ;;  %p770_p6 = por %p146_p3, %p32_p0 }
   0xa   : > { %p152_p7 = scmp.eq.s32.totalorder %s557_s23, 1  ;;  %p869_p9 = scmp.ge.s32.totalorder %s697_s21, 2 }
   0xc   : > { %p774_p8 = por %p152_p7, %p151_p4  ;;  %180 = sbr.rel (%p869_p9) target bundleno = 23 (0x17), region = 32 }
  0x11   : > { %183 = sbr.rel (!%p34_p5) target bundleno = 23 (0x17), region = 36  ;;  %s185_s30 = sand.u32 (%p34_p5), 1, %s693_s20  }
  0x12   : > { %s576_s6 = sshll.u32 (%p34_p5), %s697_s21, 4  ;;  %s560_s7 = sshll.u32 (%p34_p5), %s185_s30, 5 }
  0x13   : > { %s190_s10 = scalar_lea.vmem (%p34_p5), %s863_s0, %s576_s6  ;;  %s187_s11 = scalar_lea.vmem (%p34_p5), [#allocation2], %s560_s7 }
  0x14   : > { %v203_v0 = vld [vmem:[%s190_s10] sm:$0xff] (%p34_p5)  ;;  %v205_v1 = vld [vmem:[%s190_s10 + $0x8] sm:$0xff] (%p34_p5) }
  0x15   : > { %v207_v2 = vld [vmem:[%s190_s10 + $0x20] sm:$0xff] (%p34_p5)  ;;  %204 = vst [vmem:[%s187_s11] sm:$0xff] (%p34_p5), %v203_v0  ;;  %206 = vst [vmem:[%s187_s11 + $0x8] sm:$0xff] (%p34_p5), %v205_v1  ;;  %v209_v3 = vld [vmem:[%s190_s10 + $0x28] sm:$0xff] (%p34_p5) }
  0x16   : > { %208 = vst [vmem:[%s187_s11 + $0x10] sm:$0xff] %v207_v2  ;;  %210 = vst [vmem:[%s187_s11 + $0x18] sm:$0xff] %v209_v3 }
  0x17 PF: > { %p563_p10 = scmp.ge.s32.totalorder %s697_s21, 1  ;;  %p215_p11 = scmp.lt.s32.totalorder %s697_s21, 3 }
  0x19   : > { %p216_p12 = pnand %p563_p10, %p215_p11 }
  0x1a   : > { %s789_s12 = sand.u32 (!%p216_p12), 1, %s689_s19   ;;  %s577_s30 = sshll.u32 (!%p216_p12), %s556_s22, 8 }
  0x1b   : > { %219 = sbr.rel (%p216_p12) target bundleno = 481 (0x1e1), region = 59  ;;  %s564_s13 = sshll.u32 (!%p216_p12), %s789_s12, 5 }
  0x1c   : > { %s224_s23 = scalar_lea.vmem (!%p216_p12), [#allocation2], %s564_s13  ;;  %s565_s26 = sshll.u32 (!%p216_p12), %s789_s12, 4 }
  0x1d   : > { %s248_s6 = scalar_lea.vmem (!%p216_p12), [#allocation3], %s565_s26  ;;  %s490_s10 = scalar_lea.hbm (!%p216_p12), %s868_s5, %s577_s30 }
  0x1e   : > { %s492_s7 = sshll.u32 (!%p216_p12), %s248_s6, 4  ;;  %s478_s11 = scalar_lea.sflag (!%p216_p12), [#allocation4], %s789_s12  ;;  %s493_s7 = int_to_ptr.vmem [resolvable:$true] %s492_s7 }
  0x1f   : > { %s637_s13 = scalar_lea.vmem (!%p216_p12), %s493_s7, 256  ;;  %s701_s14 = smov (!%p216_p12), [#allocation3]  }
  0x20   : > { %v699_v4 = vmov 0.0   ;;  %v260_v5 = vld [vmem:[%s865_s2 + $0x8] sm:$0xff]  ;;  %v700_v6 = vmov 0   ;;  %v262_v7 = vld [vmem:[%s865_s2 + $0x18] sm:$0xff]  ;;  %v257_v9 = vld [vmem:[%s224_s23 + $0x10] sm:$0xff]  ;;  %vm283_vm0 = vcmask 130048   ;;  %p638_p13 = scmp.ne.s32.totalorder %s493_s7, %s637_s13 }
  0x21   : > { %360 = vmatprep.mubr.f32.mxu0 %v699_v4  ;;  %468 = vmatprep.mubr.f32.mxu1 %v699_v4  ;;  %v258_v8 = vld [vmem:[%s224_s23 + $0x18] sm:$0xff]  ;;  %v256_v10 = vld [vmem:[%s224_s23 + $0x8] sm:$0xff]  ;;  %v255_v11 = vld [vmem:[%s224_s23] sm:$0xff]  ;;  %vm400_vm1 = vcmask 261120   ;;  %s641_s22 = sshll.u32 %s701_s14, 4  ;;  %s642_s22 = int_to_ptr.vmem [resolvable:$false] %s641_s22 }
  0x22   : > { %620 = vset.pattern.permute.xlu1 %v700_v6  ;;  %619 = vset.pattern.permute.xlu0 %v700_v6  ;;  %v259_v12 = vld [vmem:[%s865_s2] sm:$0xff]  ;;  %v261_v14 = vld [vmem:[%s865_s2 + $0x10] sm:$0xff]  ;;  %v252_v15 = vld [vmem:[%s864_s1 + $0x8] sm:$0xff]  ;;  %p639_p0 = pnand %p638_p13, %p770_p6  ;;  %s643_s15 = scalar_lea.vmem %s642_s22, 512 }
  0x23   : > { %270 = vperm.xlu1 %620, %v260_v5   ;;  %280 = vperm.xlu0 %619, %v262_v7   ;;  %v251_v13 = vld [vmem:[%s864_s1] sm:$0xff]  ;;  %v253_v17 = vld [vmem:[%s864_s1 + $0x10] sm:$0xff]  ;;  %v254_v18 = vld [vmem:[%s864_s1 + $0x18] sm:$0xff]  ;;  %p644_p2 = scmp.lt.s32.totalorder %s493_s7, %s642_s22  ;;  %p645_p3 = scmp.lt.s32.totalorder %s643_s15, %s637_s13 }
  0x24   : > { %324 = vmatprep.subr.mxu0 %v258_v8  ;;  %v394_v16 = vld [vmem:[%s867_s4] sm:$0xff]  ;;  %p640_p1 = pneg %p639_p0 }
  0x25   : > { %325 = vmatpush1.msra.mxu0 %v257_v9  ;;  %v393_v46 = vld [vmem:[%s866_s3] sm:$0xff]  ;;  %p646_p4 = por %p645_p3, %p644_p2 }
  0x26   : > { %326 = vmatprep.subr.mxu0 %v256_v10 }
  0x27   : > { %327 = vmatpush1.msra.mxu0 %v255_v11  ;;  %265 = vperm.xlu1 %620, %v259_v12   ;;  %p647_p5 = pnand %p646_p4, %p640_p1 }
  0x28   : > { %566 = vmatmul.mubr.msk.f32.vlgmr.msra.gmra.mxu0 %vm283_vm0, %v251_v13  ;;  %275 = vperm.xlu0 %619, %v261_v14  }
  0x29   : > { %366 = vmatprep.mubr.f32.mxu0 %v699_v4 }
  0x2c   : > { %567 = vmatmul.mubr.msk.f32.gmra.mxu0 %vm283_vm0, %v252_v15  ;;  %397 = vperm.xlu0 %619, %v394_v16  }
  0x2d   : > { %372 = vmatprep.mubr.f32.mxu0 %v699_v4 }
  0x30   : > { %568 = vmatmul.mubr.msk.f32.gmra.mxu0 %vm283_vm0, %v253_v17 }
  0x31   : > { %378 = vmatprep.mubr.f32.mxu0 %v699_v4 }
  0x34   : > { %569 = vmatmul.mubr.msk.f32.gmra.mxu0 %vm283_vm0, %v254_v18 }
  0x9e   : > { %v281_v23 = vpop.permute.xlu0 %280  ;;  %v271_v26 = vpop.permute.xlu1 %270 }
  0xa2   : > { %v266_v34 = vpop.permute.xlu1 %265 }
  0xa3   : > { %v276_v28 = vpop.permute.xlu0 %275 }
  0xa7   : > { %v398_v48 = vpop.permute.xlu0 %397 }
  0xe8   : > { %v362_v19 = vpop.f32.mrf.mxu0 }
  0xe9   : > { %v363_v38 = vadd.f32 %v362_v19, %v266_v34 }
  0xea   : > { %v364_v20 = vpop.f32.mrf.mxu0 }
  0xeb   : > { %v365_v37 = vadd.f32 %v364_v20, %v266_v34 }
  0xec   : > { %v368_v21 = vpop.f32.mrf.mxu0 }
  0xed   : > { %v369_v36 = vadd.f32 %v368_v21, %v271_v26 }
  0xee   : > { %v370_v22 = vpop.f32.mrf.mxu0 }
  0xef   : > { %v371_v35 = vadd.f32 %v370_v22, %v271_v26 }
  0xf0   : > { %v374_v24 = vpop.f32.mrf.mxu0 }
  0xf1   : > { %v375_v33 = vadd.f32 %v374_v24, %v276_v28 }
  0xf2   : > { %v376_v25 = vpop.f32.mrf.mxu0 }
  0xf3   : > { %v377_v31 = vadd.f32 %v376_v25, %v276_v28 }
  0xf4   : > { %v380_v27 = vpop.f32.mrf.mxu0 }
  0xf5   : > { %v381_v29 = vadd.f32 %v380_v27, %v281_v23 }
  0xf6   : > { %v382_v30 = vpop.f32.mrf.mxu0 }
  0xf7   : > { %v383_v32 = vadd.f32 %v382_v30, %v281_v23 }
  0xf9   : > { %621 = vtanh.f32 %v383_v32 }
  0xfa   : > { %623 = vtanh.f32 %v381_v29 }
  0xfb   : > { %625 = vtanh.f32 %v377_v31 }
  0xfc   : > { %627 = vtanh.f32 %v375_v33 }
  0xfd   : > { %629 = vtanh.f32 %v371_v35 }
  0xfe   : > { %631 = vtanh.f32 %v369_v36 }
  0xff   : > { %633 = vtanh.f32 %v365_v37 }
 0x100   : > { %635 = vtanh.f32 %v363_v38 }
 0x106   : > { %v622_v39 = vpop.eup %621 }
 0x107   : > { %v624_v40 = vpop.eup %623  ;;  %428 = vmatprep.subr.mxu1 %v622_v39 }
 0x108   : > { %v626_v41 = vpop.eup %625  ;;  %429 = vmatpush1.msra.mxu1 %v624_v40 }
 0x109   : > { %v628_v42 = vpop.eup %627  ;;  %430 = vmatprep.subr.mxu1 %v626_v41 }
 0x10a   : > { %v630_v43 = vpop.eup %629  ;;  %431 = vmatpush1.msra.mxu1 %v628_v42 }
 0x10b   : > { %v632_v44 = vpop.eup %631  ;;  %432 = vmatprep.subr.mxu1 %v630_v43 }
 0x10c   : > { %v634_v45 = vpop.eup %633  ;;  %433 = vmatpush1.msra.mxu1 %v632_v44 }
 0x10d   : > { %v636_v47 = vpop.eup %635  ;;  %434 = vmatprep.subr.mxu1 %v634_v45 }
 0x10e   : > { %435 = vmatpush1.msra.mxu1 %v636_v47 }
 0x10f   : > { %570 = vmatmul.mubr.msk.f32.vlgmr.msra.gmra.mxu1 %vm400_vm1, %v393_v46 }
 0x1cf   : > { %v470_v49 = vpop.f32.mrf.mxu1 }
 0x1d0   : > { %v471_v50 = vadd.f32 %v470_v49, %v398_v48 }
 0x1d1   : > { %v472_v51 = vpop.f32.mrf.mxu1 }
 0x1d2   : > { %475 = vst [vmem:[%s248_s6] sm:$0xff] %v471_v50  ;;  %v473_v52 = vadd.f32 %v472_v51, %v398_v48 }
 0x1d4   : > { %476 = vst [vmem:[%s248_s6 + $0x8] sm:$0xff] %v473_v52 }
 0x1d5   : > { %650 = shalt.err (!%p647_p5)
}
 0x1d6   : > { %s651_s16 = scalar_lea.hbm %s490_s10, 256  ;;  %s655_s23 = scalar_lea.hbm %s868_s5, 512 }
 0x1d7   : > { %p652_p7 = scmp.ne.s32.totalorder %s490_s10, %s651_s16  ;;  %p656_p12 = scmp.lt.s32.totalorder %s490_s10, %s868_s5 }
 0x1d8   : > { %p657_p13 = scmp.lt.s32.totalorder %s655_s23, %s651_s16 }
 0x1d9   : > { %p653_p10 = pnand %p652_p7, %p770_p6 }
 0x1da   : > { %p658_p0 = por %p657_p13, %p656_p12 }
 0x1db   : > { %p654_p11 = pneg %p653_p10 }
 0x1dd   : > { %p659_p9 = pnand %p658_p0, %p654_p11 }
 0x1df   : > { %662 = shalt.err (!%p659_p9)
}
 0x1e0   : > { %578 = dma.vmem_to_hbm [thread:$0]  (%p770_p6), %s493_s7, 256, %s490_s10, %s478_s11  }
 0x1e1 PF: > { %s504_s30 = sand.u32 1, %s685_s18   ;;  %p872_p1 = scmp.ge.s32.totalorder %s697_s21, 2 }
 0x1e2   : > { %s505_s6 = scalar_lea.sflag [#allocation4], %s504_s30 }
 0x1e3   : > { %p581_p2 = pnand %p872_p1, %p774_p8 }
 0x1e5   : > { %p582_p3 = pneg %p581_p2 }
 0x1e7   : > { %680 = dma.done.wait (%p582_p3), %s505_s6, 256  }
 0x1e8   : > { %682 = vsyncadd (%p582_p3), %s505_s6, 4294967040  ;;  %p15_p9 = scmp.ge.s32.totalorder %s755_s24, 4   ;;  %s873_s18 = smov %s689_s19 }
 0x1e9   : > { %s874_s19 = smov %s693_s20  ;;  %s875_s20 = smov %s768_s27 }
 0x1ea   : > { %s876_s21 = smov %s755_s24  ;;  %17 = sbr.rel (!%p15_p9) target bundleno = 3 (0x3), region = 103 }
 0x1ef   :  { %510 = vsyncpa [#allocation4], 1 }
 0x1f0   :  { %512 = vsyncpa [#allocation4 + $0x1], 1 }

</bundles_post_ra>
